<compile_context>
chip_gen: v7x
topology: tpu7x:2x2x1
jax: 0.10.0
libtpu: 0.0.40
codegen_flags: <defaults>
</compile_context>

<pallas_src>
import functools

import jax
import jax.numpy as jnp
from jax.experimental import pallas as pl
from jax.experimental.pallas import tpu as pltpu

_MIB = 1024 * 1024
_LANE = 128


def _dice_stats_kernel(x_ref, y_ref, tp_ref, yv_ref, pv_ref, *,
                       nch, rows_tile, acc_rows, spatial, total_tiles,
                       needs_mask):
    o = pl.program_id(1)
    s = pl.program_id(2)
    inner = pl.num_programs(2)
    t = o * inner + s                      # global row-tile index (unclamped)
    last = total_tiles - 1

    # Zero the per-(batch, outer-chunk) accumulators on the first inner step.
    @pl.when(s == 0)
    def _():
        tp_ref[...] = jnp.zeros_like(tp_ref)
        yv_ref[...] = jnp.zeros_like(yv_ref)
        pv_ref[...] = jnp.zeros_like(pv_ref)

    x = x_ref[...].astype(jnp.float32)     # (nch, rows_tile, 128)
    y = y_ref[...].astype(jnp.float32)     # one-hot {0,1}: exact in any dtype

    # Numerically-stable softmax over channels (axis 0 = leading dim), i.e.
    # pure elementwise VPU max/add over (rows_tile, 128) vreg slabs + one EUP
    # exp and one exact reciprocal per voxel.
    m = jnp.max(x, axis=0, keepdims=True)
    e = jnp.exp(x - m)
    inv = pl.reciprocal(jnp.sum(e, axis=0, keepdims=True), approx=False)
    pred = e * inv

    def _fold(v):
        # (nch, rows_tile, 128) -> (nch, acc_rows, 128): whole-vreg adds only.
        if rows_tile == acc_rows:
            return v
        return jnp.sum(v.reshape(nch, rows_tile // acc_rows, acc_rows, _LANE),
                       axis=1)

    def _accum(yv, pv):
        tp_ref[...] += _fold(yv * pv)
        yv_ref[...] += _fold(yv)
        pv_ref[...] += _fold(pv)

    # Tiles strictly before the last real tile are always fully valid.
    @pl.when(t < last)
    def _():
        _accum(y, pred)

    # Last real tile: apply the validity mask only here (cheap everywhere
    # else).  Tiles with t > last are clamped grid-padding repeats -> skipped.
    @pl.when(t == last)
    def _():
        if needs_mask:
            row = jax.lax.broadcasted_iota(jnp.int32, (1, rows_tile, _LANE), 1)
            lane = jax.lax.broadcasted_iota(jnp.int32, (1, rows_tile, _LANE), 2)
            flat = (last * rows_tile + row) * _LANE + lane
            valid = flat < spatial
            # Mask both streams: zero-padded lanes make pred = 1/nch, and a
            # partial final block leaves garbage (possibly NaN/Inf) rows.
            _accum(jnp.where(valid, y, 0.0), jnp.where(valid, pred, 0.0))
        else:
            _accum(y, pred)


def _vmem_budget_bytes():
    """Working-set target for tile sizing; leaves headroom under the limit."""
    try:
        cap = int(getattr(pltpu.get_tpu_info(), "vmem_capacity_bytes",
                          128 * _MIB))
    except Exception:  # off-device tracing / older runtimes
        cap = 128 * _MIB
    # v5e/v6e: 128 MiB physical; v7x: 64 MiB per TC -> 16 MiB working set.
    return min(cap // 4, 16 * _MIB)


def _pick_rows_tile(nch, n_rows, x_itemsize, y_itemsize, budget):
    """Largest multiple-of-8 row tile whose pipelined working set fits."""
    if n_rows < 8:
        return n_rows
    # Per 128-lane row: double-buffered input DMA windows for both streams
    # plus ~3 f32 in-kernel temporaries (x/e/pred) per channel.
    per_row = _LANE * nch * (2 * (x_itemsize + y_itemsize) + 3 * 4)
    max_rows = max(8, (budget // per_row) // 8 * 8)
    return int(min(max_rows, (n_rows // 8) * 8))


def dice_loss_vector_weighted(logs, yb_oh, weights, eps=1e-5):
    """JAX/Pallas equivalent of dice_loss_vector_weighted.forward (mask=None)."""
    assert logs.shape == yb_oh.shape
    nb, nch = logs.shape[:2]
    spatial = 1
    for d in logs.shape[2:]:
        spatial *= d
    # torch-style broadcast of weights.reshape((1,-1,1)) against (nb, nch-1)
    # right-aligns len(weights) with the batch axis.
    assert len(weights) in (1, nb) or nb == 1, \
        "weights must broadcast against the batch axis (len in {1, nb})"

    n_rows = pl.cdiv(spatial, _LANE)
    s_pad = n_rows * _LANE

    logs3 = jnp.reshape(logs, (nb, nch, spatial))       # free reshape
    y3 = jnp.reshape(yb_oh, (nb, nch, spatial))
    if s_pad != spatial:
        pad = ((0, 0), (0, 0), (0, s_pad - spatial))
        logs3 = jnp.pad(logs3, pad)
        y3 = jnp.pad(y3, pad)
    logs4 = jnp.reshape(logs3, (nb, nch, n_rows, _LANE))
    y4 = jnp.reshape(y3, (nb, nch, n_rows, _LANE))

    budget = _vmem_budget_bytes()
    rows_tile = _pick_rows_tile(nch, n_rows, logs.dtype.itemsize,
                                yb_oh.dtype.itemsize, budget)
    acc_rows = 8 if rows_tile % 8 == 0 else rows_tile
    total_tiles = pl.cdiv(n_rows, rows_tile)
    n_outer = 2 if total_tiles >= 2 else 1              # v7x megacore split
    inner = pl.cdiv(total_tiles, n_outer)
    needs_mask = (s_pad != spatial) or (total_tiles * rows_tile != n_rows)

    def in_idx(b, o, s):
        # Clamp grid-padding repeats to the last real row tile (their
        # contribution is skipped in-kernel).
        t = jnp.minimum(o * inner + s, total_tiles - 1)
        return (b, 0, t, 0)

    def out_idx(b, o, s):
        return (b, o, 0, 0, 0)

    out_sds = jax.ShapeDtypeStruct((nb, n_outer, nch, acc_rows, _LANE),
                                   jnp.float32)
    out_spec = pl.BlockSpec((None, None, nch, acc_rows, _LANE), out_idx)
    in_spec = pl.BlockSpec((None, nch, rows_tile, _LANE), in_idx)

    kernel = functools.partial(
        _dice_stats_kernel, nch=nch, rows_tile=rows_tile, acc_rows=acc_rows,
        spatial=spatial, total_tiles=total_tiles, needs_mask=needs_mask)

    tp_p, yv_p, pv_p = pl.pallas_call(
        kernel,
        out_shape=[out_sds] * 3,
        grid_spec=pltpu.PrefetchScalarGridSpec(
            num_scalar_prefetch=0,
            grid=(nb, n_outer, inner),
            in_specs=[in_spec, in_spec],
            out_specs=[out_spec] * 3,
        ),
        compiler_params=pltpu.CompilerParams(
            dimension_semantics=("parallel", "parallel", "arbitrary"),
            vmem_limit_bytes=32 * _MIB),
    )(logs4, y4)

    # Tiny final collapse of the (nb, n_outer, nch, acc_rows, 128) partials.
    tp = jnp.sum(tp_p, axis=(1, 3, 4))[:, 1:]
    yv = jnp.sum(yv_p, axis=(1, 3, 4))[:, 1:]
    pv = jnp.sum(pv_p, axis=(1, 3, 4))[:, 1:]

    w = jnp.asarray(weights, dtype=jnp.float32).reshape((1, -1, 1))
    w1 = w * 0.5
    w2 = (2.0 - w) * 0.5
    dice = (tp + eps) / (w1 * yv + w2 * pv + eps)
    return 1.0 - dice.mean()


def _reference(logs, yb_oh, weights, eps):
    """Pure-JAX reference with the same math as the torch forward."""
    nb, nch = logs.shape[:2]
    pred = jax.nn.softmax(logs.astype(jnp.float32), axis=1)
    pred = pred.reshape(nb, nch, -1)[:, 1:]
    y = yb_oh.astype(jnp.float32).reshape(nb, nch, -1)[:, 1:]
    tp = jnp.sum(y * pred, axis=2)
    yv = jnp.sum(y, axis=2)
    pv = jnp.sum(pred, axis=2)
    w = jnp.asarray(weights, jnp.float32).reshape((1, -1, 1))
    dice = (tp + eps) / (0.5 * w * yv + 0.5 * (2.0 - w) * pv + eps)
    return 1.0 - dice.mean()


if __name__ == "__main__":
    key = jax.random.PRNGKey(0)
    k1, k2, k3, k4, k5, k6 = jax.random.split(key, 6)
    eps = 1e-5

    # Case 1: spatial divisible by 128 -> no pad, no mask.  len(weights)==nb.
    nb, nch, H, W = 2, 4, 16, 16
    weights = [1.0, 0.5]
    logs = jax.random.normal(k1, (nb, nch, H, W), dtype=jnp.float32)
    labels = jax.random.randint(k2, (nb, H, W), 0, nch)
    yb_oh = jax.nn.one_hot(labels, nch, dtype=jnp.bfloat16, axis=1)
    loss = jax.block_until_ready(dice_loss_vector_weighted(logs, yb_oh, weights, eps))
    ref = _reference(logs, yb_oh, weights, eps)
    assert abs(float(loss) - float(ref)) < 2e-4, (float(loss), float(ref))

    # Case 2: ragged spatial (15*15=225) -> lane pad + gated in-kernel mask.
    nb, nch, H, W = 2, 4, 15, 15
    logs2 = jax.random.normal(k3, (nb, nch, H, W), dtype=jnp.float32)
    labels2 = jax.random.randint(k4, (nb, H, W), 0, nch)
    yb_oh2 = jax.nn.one_hot(labels2, nch, dtype=jnp.bfloat16, axis=1)
    loss2 = jax.block_until_ready(dice_loss_vector_weighted(logs2, yb_oh2, weights, eps))
    ref2 = _reference(logs2, yb_oh2, weights, eps)
    assert abs(float(loss2) - float(ref2)) < 2e-4, (float(loss2), float(ref2))

    # Case 3: nb=1, nch=3, 40x40 -> multi-tile grid, n_outer=2 split, ragged
    # final row block (garbage rows) + ragged lanes, both masked.
    nb, nch, H, W = 1, 3, 40, 40
    logs3 = jax.random.normal(k5, (nb, nch, H, W), dtype=jnp.float32)
    labels3 = jax.random.randint(k6, (nb, H, W), 0, nch)
    yb_oh3 = jax.nn.one_hot(labels3, nch, dtype=jnp.bfloat16, axis=1)
    loss3 = jax.block_until_ready(dice_loss_vector_weighted(logs3, yb_oh3, [1.0], eps))
    ref3 = _reference(logs3, yb_oh3, [1.0], eps)
    assert abs(float(loss3) - float(ref3)) < 2e-4, (float(loss3), float(ref3))

    print("KERNEL_OK")
</pallas_src>

<mosaic_0001>
module attributes {stable_mosaic.version = 11 : i64} {
  func.func @_dice_stats_kernel(%arg0: i32, %arg1: i32, %arg2: i32, %arg3: memref<1x4x2x128xf32, #tpu.memory_space<vmem>>, %arg4: memref<1x4x2x128xbf16, #tpu.memory_space<vmem>>, %arg5: memref<1x1x4x2x128xf32, #tpu.memory_space<vmem>>, %arg6: memref<1x1x4x2x128xf32, #tpu.memory_space<vmem>>, %arg7: memref<1x1x4x2x128xf32, #tpu.memory_space<vmem>>) attributes {dimension_semantics = [#tpu.dimension_semantics<parallel>, #tpu.dimension_semantics<parallel>, #tpu.dimension_semantics<arbitrary>], iteration_bounds = array<i64: 2, 1, 1>, scalar_prefetch = 0 : i64, scratch_operands = 0 : i64, tpu.core_type = #tpu.core_type<tc>, window_params = [{transform_indices = @transform_0, window_bounds = array<i64: 1, 4, 2, 128>}, {transform_indices = @transform_1, window_bounds = array<i64: 1, 4, 2, 128>}, {transform_indices = @transform_2, window_bounds = array<i64: 1, 1, 4, 2, 128>}, {transform_indices = @transform_3, window_bounds = array<i64: 1, 1, 4, 2, 128>}, {transform_indices = @transform_4, window_bounds = array<i64: 1, 1, 4, 2, 128>}]} {
    %c1_i32 = arith.constant 1 : i32
    %0 = arith.muli %arg1, %c1_i32 : i32
    %1 = arith.addi %0, %arg2 : i32
    %c0_i32 = arith.constant 0 : i32
    %2 = arith.cmpi eq, %arg2, %c0_i32 : i32
    %3 = arith.extui %2 : i1 to i32
    %c0_i32_0 = arith.constant 0 : i32
    %4 = arith.cmpi ne, %3, %c0_i32_0 : i32
    scf.if %4 {
      %cst_13 = arith.constant 0.000000e+00 : f32
      %26 = vector.broadcast %cst_13 : f32 to vector<4x2x128xf32>
      %c0_14 = arith.constant 0 : index
      %c0_15 = arith.constant 0 : index
      %c0_16 = arith.constant 0 : index
      %c0_17 = arith.constant 0 : index
      %c0_18 = arith.constant 0 : index
      %27 = vector.load %arg5[%c0_14, %c0_15, %c0_16, %c0_17, %c0_18] : memref<1x1x4x2x128xf32, #tpu.memory_space<vmem>>, vector<1x1x4x2x128xf32>
      %28 = vector.shape_cast %27 : vector<1x1x4x2x128xf32> to vector<4x2x128xf32>
      %29 = vector.shape_cast %26 : vector<4x2x128xf32> to vector<1x1x4x2x128xf32>
      tpu.vector_store %arg5[%c0_14, %c0_15, %c0_16, %c0_17, %c0_18], %29 {strides = array<i32>} : memref<1x1x4x2x128xf32, #tpu.memory_space<vmem>>, vector<1x1x4x2x128xf32>,
      %cst_19 = arith.constant 0.000000e+00 : f32
      %30 = vector.broadcast %cst_19 : f32 to vector<4x2x128xf32>
      %c0_20 = arith.constant 0 : index
      %c0_21 = arith.constant 0 : index
      %c0_22 = arith.constant 0 : index
      %c0_23 = arith.constant 0 : index
      %c0_24 = arith.constant 0 : index
      %31 = vector.load %arg6[%c0_20, %c0_21, %c0_22, %c0_23, %c0_24] : memref<1x1x4x2x128xf32, #tpu.memory_space<vmem>>, vector<1x1x4x2x128xf32>
      %32 = vector.shape_cast %31 : vector<1x1x4x2x128xf32> to vector<4x2x128xf32>
      %33 = vector.shape_cast %30 : vector<4x2x128xf32> to vector<1x1x4x2x128xf32>
      tpu.vector_store %arg6[%c0_20, %c0_21, %c0_22, %c0_23, %c0_24], %33 {strides = array<i32>} : memref<1x1x4x2x128xf32, #tpu.memory_space<vmem>>, vector<1x1x4x2x128xf32>,
      %cst_25 = arith.constant 0.000000e+00 : f32
      %34 = vector.broadcast %cst_25 : f32 to vector<4x2x128xf32>
      %c0_26 = arith.constant 0 : index
      %c0_27 = arith.constant 0 : index
      %c0_28 = arith.constant 0 : index
      %c0_29 = arith.constant 0 : index
      %c0_30 = arith.constant 0 : index
      %35 = vector.load %arg7[%c0_26, %c0_27, %c0_28, %c0_29, %c0_30] : memref<1x1x4x2x128xf32, #tpu.memory_space<vmem>>, vector<1x1x4x2x128xf32>
      %36 = vector.shape_cast %35 : vector<1x1x4x2x128xf32> to vector<4x2x128xf32>
      %37 = vector.shape_cast %34 : vector<4x2x128xf32> to vector<1x1x4x2x128xf32>
      tpu.vector_store %arg7[%c0_26, %c0_27, %c0_28, %c0_29, %c0_30], %37 {strides = array<i32>} : memref<1x1x4x2x128xf32, #tpu.memory_space<vmem>>, vector<1x1x4x2x128xf32>,
    } else {
    }
    %c0 = arith.constant 0 : index
    %c0_1 = arith.constant 0 : index
    %c0_2 = arith.constant 0 : index
    %c0_3 = arith.constant 0 : index
    %5 = vector.load %arg3[%c0, %c0_1, %c0_2, %c0_3] : memref<1x4x2x128xf32, #tpu.memory_space<vmem>>, vector<1x4x2x128xf32>
    %6 = vector.shape_cast %5 : vector<1x4x2x128xf32> to vector<4x2x128xf32>
    %c0_4 = arith.constant 0 : index
    %c0_5 = arith.constant 0 : index
    %c0_6 = arith.constant 0 : index
    %c0_7 = arith.constant 0 : index
    %7 = vector.load %arg4[%c0_4, %c0_5, %c0_6, %c0_7] : memref<1x4x2x128xbf16, #tpu.memory_space<vmem>>, vector<1x4x2x128xbf16>
    %8 = vector.shape_cast %7 : vector<1x4x2x128xbf16> to vector<4x2x128xbf16>
    %9 = arith.extf %8 : vector<4x2x128xbf16> to vector<4x2x128xf32>
    %cst = arith.constant dense<0xFF800000> : vector<2x128xf32>
    %10 = vector.multi_reduction <maximumf>, %6, %cst [0] : vector<4x2x128xf32> to vector<2x128xf32>
    %11 = vector.shape_cast %10 : vector<2x128xf32> to vector<1x2x128xf32>
    %12 = vector.broadcast %11 : vector<1x2x128xf32> to vector<4x2x128xf32>
    %13 = arith.subf %6, %12 : vector<4x2x128xf32>
    %14 = math.exp %13 : vector<4x2x128xf32>
    %cst_8 = arith.constant dense<0.000000e+00> : vector<2x128xf32>
    %15 = vector.multi_reduction <add>, %14, %cst_8 [0] : vector<4x2x128xf32> to vector<2x128xf32>
    %16 = vector.shape_cast %15 : vector<2x128xf32> to vector<1x2x128xf32>
    %17 = tpu.reciprocal %16 : vector<1x2x128xf32> -> vector<1x2x128xf32>
    %18 = vector.broadcast %17 : vector<1x2x128xf32> to vector<4x2x128xf32>
    %19 = arith.mulf %14, %18 : vector<4x2x128xf32>
    %c0_i32_9 = arith.constant 0 : i32
    %20 = arith.cmpi slt, %1, %c0_i32_9 : i32
    %21 = arith.extui %20 : i1 to i32
    %c0_i32_10 = arith.constant 0 : i32
    %22 = arith.cmpi ne, %21, %c0_i32_10 : i32
    scf.if %22 {
      %c0_13 = arith.constant 0 : index
      %c0_14 = arith.constant 0 : index
      %c0_15 = arith.constant 0 : index
      %c0_16 = arith.constant 0 : index
      %c0_17 = arith.constant 0 : index
      %26 = vector.load %arg5[%c0_13, %c0_14, %c0_15, %c0_16, %c0_17] : memref<1x1x4x2x128xf32, #tpu.memory_space<vmem>>, vector<1x1x4x2x128xf32>
      %27 = vector.shape_cast %26 : vector<1x1x4x2x128xf32> to vector<4x2x128xf32>
      %28 = arith.mulf %9, %19 : vector<4x2x128xf32>
      %29 = arith.addf %27, %28 : vector<4x2x128xf32>
      %c0_18 = arith.constant 0 : index
      %c0_19 = arith.constant 0 : index
      %c0_20 = arith.constant 0 : index
      %c0_21 = arith.constant 0 : index
      %c0_22 = arith.constant 0 : index
      %30 = vector.load %arg5[%c0_18, %c0_19, %c0_20, %c0_21, %c0_22] : memref<1x1x4x2x128xf32, #tpu.memory_space<vmem>>, vector<1x1x4x2x128xf32>
      %31 = vector.shape_cast %30 : vector<1x1x4x2x128xf32> to vector<4x2x128xf32>
      %32 = vector.shape_cast %29 : vector<4x2x128xf32> to vector<1x1x4x2x128xf32>
      tpu.vector_store %arg5[%c0_18, %c0_19, %c0_20, %c0_21, %c0_22], %32 {strides = array<i32>} : memref<1x1x4x2x128xf32, #tpu.memory_space<vmem>>, vector<1x1x4x2x128xf32>,
      %c0_23 = arith.constant 0 : index
      %c0_24 = arith.constant 0 : index
      %c0_25 = arith.constant 0 : index
      %c0_26 = arith.constant 0 : index
      %c0_27 = arith.constant 0 : index
      %33 = vector.load %arg6[%c0_23, %c0_24, %c0_25, %c0_26, %c0_27] : memref<1x1x4x2x128xf32, #tpu.memory_space<vmem>>, vector<1x1x4x2x128xf32>
      %34 = vector.shape_cast %33 : vector<1x1x4x2x128xf32> to vector<4x2x128xf32>
      %35 = arith.addf %34, %9 : vector<4x2x128xf32>
      %c0_28 = arith.constant 0 : index
      %c0_29 = arith.constant 0 : index
      %c0_30 = arith.constant 0 : index
      %c0_31 = arith.constant 0 : index
      %c0_32 = arith.constant 0 : index
      %36 = vector.load %arg6[%c0_28, %c0_29, %c0_30, %c0_31, %c0_32] : memref<1x1x4x2x128xf32, #tpu.memory_space<vmem>>, vector<1x1x4x2x128xf32>
      %37 = vector.shape_cast %36 : vector<1x1x4x2x128xf32> to vector<4x2x128xf32>
      %38 = vector.shape_cast %35 : vector<4x2x128xf32> to vector<1x1x4x2x128xf32>
      tpu.vector_store %arg6[%c0_28, %c0_29, %c0_30, %c0_31, %c0_32], %38 {strides = array<i32>} : memref<1x1x4x2x128xf32, #tpu.memory_space<vmem>>, vector<1x1x4x2x128xf32>,
      %c0_33 = arith.constant 0 : index
      %c0_34 = arith.constant 0 : index
      %c0_35 = arith.constant 0 : index
      %c0_36 = arith.constant 0 : index
      %c0_37 = arith.constant 0 : index
      %39 = vector.load %arg7[%c0_33, %c0_34, %c0_35, %c0_36, %c0_37] : memref<1x1x4x2x128xf32, #tpu.memory_space<vmem>>, vector<1x1x4x2x128xf32>
      %40 = vector.shape_cast %39 : vector<1x1x4x2x128xf32> to vector<4x2x128xf32>
      %41 = arith.addf %40, %19 : vector<4x2x128xf32>
      %c0_38 = arith.constant 0 : index
      %c0_39 = arith.constant 0 : index
      %c0_40 = arith.constant 0 : index
      %c0_41 = arith.constant 0 : index
      %c0_42 = arith.constant 0 : index
      %42 = vector.load %arg7[%c0_38, %c0_39, %c0_40, %c0_41, %c0_42] : memref<1x1x4x2x128xf32, #tpu.memory_space<vmem>>, vector<1x1x4x2x128xf32>
      %43 = vector.shape_cast %42 : vector<1x1x4x2x128xf32> to vector<4x2x128xf32>
      %44 = vector.shape_cast %41 : vector<4x2x128xf32> to vector<1x1x4x2x128xf32>
      tpu.vector_store %arg7[%c0_38, %c0_39, %c0_40, %c0_41, %c0_42], %44 {strides = array<i32>} : memref<1x1x4x2x128xf32, #tpu.memory_space<vmem>>, vector<1x1x4x2x128xf32>,
    } else {
    }
    %c0_i32_11 = arith.constant 0 : i32
    %23 = arith.cmpi eq, %1, %c0_i32_11 : i32
    %24 = arith.extui %23 : i1 to i32
    %c0_i32_12 = arith.constant 0 : i32
    %25 = arith.cmpi ne, %24, %c0_i32_12 : i32
    scf.if %25 {
      %c0_13 = arith.constant 0 : index
      %c0_14 = arith.constant 0 : index
      %c0_15 = arith.constant 0 : index
      %c0_16 = arith.constant 0 : index
      %c0_17 = arith.constant 0 : index
      %26 = vector.load %arg5[%c0_13, %c0_14, %c0_15, %c0_16, %c0_17] : memref<1x1x4x2x128xf32, #tpu.memory_space<vmem>>, vector<1x1x4x2x128xf32>
      %27 = vector.shape_cast %26 : vector<1x1x4x2x128xf32> to vector<4x2x128xf32>
      %28 = arith.mulf %9, %19 : vector<4x2x128xf32>
      %29 = arith.addf %27, %28 : vector<4x2x128xf32>
      %c0_18 = arith.constant 0 : index
      %c0_19 = arith.constant 0 : index
      %c0_20 = arith.constant 0 : index
      %c0_21 = arith.constant 0 : index
      %c0_22 = arith.constant 0 : index
      %30 = vector.load %arg5[%c0_18, %c0_19, %c0_20, %c0_21, %c0_22] : memref<1x1x4x2x128xf32, #tpu.memory_space<vmem>>, vector<1x1x4x2x128xf32>
      %31 = vector.shape_cast %30 : vector<1x1x4x2x128xf32> to vector<4x2x128xf32>
      %32 = vector.shape_cast %29 : vector<4x2x128xf32> to vector<1x1x4x2x128xf32>
      tpu.vector_store %arg5[%c0_18, %c0_19, %c0_20, %c0_21, %c0_22], %32 {strides = array<i32>} : memref<1x1x4x2x128xf32, #tpu.memory_space<vmem>>, vector<1x1x4x2x128xf32>,
      %c0_23 = arith.constant 0 : index
      %c0_24 = arith.constant 0 : index
      %c0_25 = arith.constant 0 : index
      %c0_26 = arith.constant 0 : index
      %c0_27 = arith.constant 0 : index
      %33 = vector.load %arg6[%c0_23, %c0_24, %c0_25, %c0_26, %c0_27] : memref<1x1x4x2x128xf32, #tpu.memory_space<vmem>>, vector<1x1x4x2x128xf32>
      %34 = vector.shape_cast %33 : vector<1x1x4x2x128xf32> to vector<4x2x128xf32>
      %35 = arith.addf %34, %9 : vector<4x2x128xf32>
      %c0_28 = arith.constant 0 : index
      %c0_29 = arith.constant 0 : index
      %c0_30 = arith.constant 0 : index
      %c0_31 = arith.constant 0 : index
      %c0_32 = arith.constant 0 : index
      %36 = vector.load %arg6[%c0_28, %c0_29, %c0_30, %c0_31, %c0_32] : memref<1x1x4x2x128xf32, #tpu.memory_space<vmem>>, vector<1x1x4x2x128xf32>
      %37 = vector.shape_cast %36 : vector<1x1x4x2x128xf32> to vector<4x2x128xf32>
      %38 = vector.shape_cast %35 : vector<4x2x128xf32> to vector<1x1x4x2x128xf32>
      tpu.vector_store %arg6[%c0_28, %c0_29, %c0_30, %c0_31, %c0_32], %38 {strides = array<i32>} : memref<1x1x4x2x128xf32, #tpu.memory_space<vmem>>, vector<1x1x4x2x128xf32>,
      %c0_33 = arith.constant 0 : index
      %c0_34 = arith.constant 0 : index
      %c0_35 = arith.constant 0 : index
      %c0_36 = arith.constant 0 : index
      %c0_37 = arith.constant 0 : index
      %39 = vector.load %arg7[%c0_33, %c0_34, %c0_35, %c0_36, %c0_37] : memref<1x1x4x2x128xf32, #tpu.memory_space<vmem>>, vector<1x1x4x2x128xf32>
      %40 = vector.shape_cast %39 : vector<1x1x4x2x128xf32> to vector<4x2x128xf32>
      %41 = arith.addf %40, %19 : vector<4x2x128xf32>
      %c0_38 = arith.constant 0 : index
      %c0_39 = arith.constant 0 : index
      %c0_40 = arith.constant 0 : index
      %c0_41 = arith.constant 0 : index
      %c0_42 = arith.constant 0 : index
      %42 = vector.load %arg7[%c0_38, %c0_39, %c0_40, %c0_41, %c0_42] : memref<1x1x4x2x128xf32, #tpu.memory_space<vmem>>, vector<1x1x4x2x128xf32>
      %43 = vector.shape_cast %42 : vector<1x1x4x2x128xf32> to vector<4x2x128xf32>
      %44 = vector.shape_cast %41 : vector<4x2x128xf32> to vector<1x1x4x2x128xf32>
      tpu.vector_store %arg7[%c0_38, %c0_39, %c0_40, %c0_41, %c0_42], %44 {strides = array<i32>} : memref<1x1x4x2x128xf32, #tpu.memory_space<vmem>>, vector<1x1x4x2x128xf32>,
    } else {
    }
    return
  }
  func.func @transform_0(%arg0: i32, %arg1: i32, %arg2: i32) -> (i32, i32, i32, i32) {
    %c1_i32 = arith.constant 1 : i32
    %0 = arith.muli %arg1, %c1_i32 : i32
    %1 = arith.addi %0, %arg2 : i32
    %c0_i32 = arith.constant 0 : i32
    %2 = arith.minsi %1, %c0_i32 : i32
    %c0_i32_0 = arith.constant 0 : i32
    %c0_i32_1 = arith.constant 0 : i32
    %c0_i32_2 = arith.constant 0 : i32
    return %arg0, %c0_i32_0, %2, %c0_i32_1 : i32, i32, i32, i32
  }
  func.func @transform_1(%arg0: i32, %arg1: i32, %arg2: i32) -> (i32, i32, i32, i32) {
    %c1_i32 = arith.constant 1 : i32
    %0 = arith.muli %arg1, %c1_i32 : i32
    %1 = arith.addi %0, %arg2 : i32
    %c0_i32 = arith.constant 0 : i32
    %2 = arith.minsi %1, %c0_i32 : i32
    %c0_i32_0 = arith.constant 0 : i32
    %c0_i32_1 = arith.constant 0 : i32
    %c0_i32_2 = arith.constant 0 : i32
    return %arg0, %c0_i32_0, %2, %c0_i32_1 : i32, i32, i32, i32
  }
  func.func @transform_2(%arg0: i32, %arg1: i32, %arg2: i32) -> (i32, i32, i32, i32, i32) {
    %c0_i32 = arith.constant 0 : i32
    %c0_i32_0 = arith.constant 0 : i32
    %c0_i32_1 = arith.constant 0 : i32
    %c0_i32_2 = arith.constant 0 : i32
    return %arg0, %arg1, %c0_i32, %c0_i32_0, %c0_i32_1 : i32, i32, i32, i32, i32
  }
  func.func @transform_3(%arg0: i32, %arg1: i32, %arg2: i32) -> (i32, i32, i32, i32, i32) {
    %c0_i32 = arith.constant 0 : i32
    %c0_i32_0 = arith.constant 0 : i32
    %c0_i32_1 = arith.constant 0 : i32
    %c0_i32_2 = arith.constant 0 : i32
    return %arg0, %arg1, %c0_i32, %c0_i32_0, %c0_i32_1 : i32, i32, i32, i32, i32
  }
  func.func @transform_4(%arg0: i32, %arg1: i32, %arg2: i32) -> (i32, i32, i32, i32, i32) {
    %c0_i32 = arith.constant 0 : i32
    %c0_i32_0 = arith.constant 0 : i32
    %c0_i32_1 = arith.constant 0 : i32
    %c0_i32_2 = arith.constant 0 : i32
    return %arg0, %arg1, %c0_i32, %c0_i32_0, %c0_i32_1 : i32, i32, i32, i32, i32
  }
}

</mosaic_0001>

<bundles_post_ra>
// kernel: tpu_custom_call.1
= control target key start
LH: loop header
LB: loop body
LE: loop exit
PB: predicated region body
PF: predicated region fallthrough
CT: control target
= control target key end

     0   :  { %s1497_s0 = inlined_call_operand.hbm [shape: f32[2,4,2,128], index: 0, kind: input, shape index: {}]   ;;  %s1498_s1 = inlined_call_operand.hbm [shape: bf16[2,4,2,128], index: 1, kind: input, shape index: {}]   ;;  %s1499_s2 = inlined_call_operand.hbm [shape: f32[2,1,4,2,128], index: 2, kind: output, shape index: {0}]   ;;  %s1500_s3 = inlined_call_operand.hbm [shape: f32[2,1,4,2,128], index: 3, kind: output, shape index: {1}]   ;;  %s1501_s4 = inlined_call_operand.hbm [shape: f32[2,1,4,2,128], index: 4, kind: output, shape index: {2}]  }
   0x1   :  { %1505 = sst [smem:[#allocation15_spill]] %s1497_s0 }
   0x2   :  { %10 = vsyncpa [#allocation3], 0 }
   0x3   :  { %12 = vsyncpa [#allocation3 + $0x1], 0 }
   0x4   :  { %13 = vsyncpa [#allocation6], 0 }
   0x5   :  { %15 = vsyncpa [#allocation6 + $0x1], 0 }
   0x6   :  { %16 = vsyncpa [#allocation4], 0 }
   0x7   :  { %18 = vsyncpa [#allocation4 + $0x1], 0 }
   0x8   :  { %19 = vsyncpa [#allocation9], 0 }
   0x9   :  { %21 = vsyncpa [#allocation9 + $0x1], 0  ;;  %s1092_s15 = smov 0   ;;  %s1094_s16 = smov 0  }
   0xa   :  { %s1096_s17 = smov 0   ;;  %s1098_s18 = smov 0  }
   0xb   :  { %s1100_s19 = smov 0   ;;  %s1102_s20 = smov 0  }
   0xc LB: > { %s1123_s21 = sadd.s32 4294967295, %s1053_s20   ;;  %s1503_s22 = sadd.s32 4294967294, %s1053_s20   ;;  %s1053_s20 = sphi %s1102_s20, %s27_s20   ;;  %s1049_s19 = sphi %s1100_s19, %s1523_s19   ;;  %s1045_s18 = sphi %s1098_s18, %s1522_s18   ;;  %s1041_s17 = sphi %s1096_s17, %s1521_s17   ;;  %s1037_s16 = sphi %s1094_s16, %s1520_s16   ;;  %s1033_s15 = sphi %s1092_s15, %s1519_s15  }
   0xd   : > { %s46_s23 = sadd.s32 1, %s1049_s19  ;;  %s61_s24 = sadd.s32 1, %s1041_s17 }
   0xe   : > { %p48_p0 = scmp.ge.s32.totalorder %s46_s23, 2  ;;  %p68_p1 = scmp.ne.s32.totalorder %s1041_s17, %s1037_s16 }
   0xf   : > { %p69_p2 = scmp.eq.s32.totalorder %s1053_s20, 0  ;;  %p74_p3 = scmp.ne.s32.totalorder %s1037_s16, %s1033_s15 }
  0x10   : > { %s1525_s23 = smov (%p48_p0, %s46_s23), 0  ;;  %p75_p5 = scmp.eq.s32.totalorder %s1123_s21, 0 }
  0x11   : > { %p1135_p4 = por %p69_p2, %p68_p1  ;;  %s56_s26 = ssub.s32 %s1049_s19, %s1525_s23 }
  0x12   : > { %p134_p6 = scmp.eq.s32.totalorder %s1123_s21, 1  ;;  %p59_p7 = scmp.eq.s32.totalorder %s56_s26, 0 }
  0x13   : > { %p1143_p8 = por %p75_p5, %p74_p3  ;;  %p140_p10 = scmp.eq.s32.totalorder %s1503_s22, 1 }
  0x14   : > { %p1147_p9 = por %p134_p6, %p68_p1  ;;  %p780_p13 = scmp.lt.s32.totalorder %s1053_s20, 2 }
  0x15   : > { %s1507_s27 = scalar_select %p1143_p8, 1, 0 }
  0x16   : > { %s1508_s28 = scalar_select %p1147_p9, 1, 0 }
  0x17   : > { %s1154_s29 = scalar_select %p59_p7, %s1041_s17, %s61_s24  }
  0x18   : > { %p1156_p11 = por %p140_p10, %p74_p3  ;;  %s1163_s5 = sand.u32 1, %s1041_s17  }
  0x19   : > { %s725_s6 = sshll.u32 %s1163_s5, 3  ;;  %s748_s7 = sshll.u32 %s1049_s19, 7 }
  0x1a   : > { %s1509_s30 = scalar_select %p1156_p11, 1, 0 }
  0x1b   : > { %s1510_s0 = sld [smem:[#allocation15_spill]]  ;;  %s220_s11 = scalar_lea.vmem [#allocation2], %s725_s6 }
  0x1c   : > { %s231_s12 = sshll.u32 %s220_s11, 4  ;;  %p1176_p0 = pnand %p780_p13, %p1135_p4  ;;  %s1172_s12 = int_to_ptr.vmem [resolvable:$true] %s231_s12 }
  0x1d   : > { %s217_s14 = scalar_lea.sflag [#allocation3], %s1163_s5 }
  0x1e   : > { %p849_p3 = pneg %p1176_p0 }
  0x21   : > { %s1170_s10 = scalar_lea.hbm %s1510_s0, %s748_s7  ;;  %s852_s25 = scalar_lea.hbm %s1510_s0, 256 }
  0x22   : > { %s847_s24 = scalar_lea.hbm %s1170_s10, 128  ;;  %p853_p4 = scmp.lt.u32.totalorder %s1170_s10, %s1510_s0 }
  0x23   : > { %p848_p2 = scmp.ne.s32.totalorder %s1170_s10, %s847_s24  ;;  %p854_p7 = scmp.lt.u32.totalorder %s852_s25, %s847_s24 }
  0x24   : > { %p856_p13 = scmp.lt.u32.totalorder %s847_s24, %s1170_s10 }
  0x25   : > { %p850_p5 = pnand %p849_p3, %p848_p2  ;;  %p855_p10 = por %p854_p7, %p853_p4 }
  0x27   : > { %p851_p6 = pneg %p850_p5  ;;  %p857_p12 = por %p856_p13, %p855_p10 }
  0x29   : > { %p858_p1 = pnand %p857_p12, %p851_p6 }
  0x2b   : > { %861 = shalt.err (!%p858_p1)
}
  0x2c   : > { %s862_s9 = scalar_lea.vmem %s1172_s12, 128  ;;  %s1055_s11 = smov [#allocation2]  }
  0x2d   : > { %p863_p2 = scmp.ne.s32.totalorder %s1172_s12, %s862_s9  ;;  %s867_s26 = sshll.u32 %s1055_s11, 4  ;;  %s868_s26 = int_to_ptr.vmem [resolvable:$false] %s867_s26 }
  0x2e   : > { %s869_s6 = scalar_lea.vmem %s868_s26, 256  ;;  %p870_p9 = scmp.lt.s32.totalorder %s1172_s12, %s868_s26 }
  0x2f   : > { %p865_p5 = pnand %p863_p2, %p849_p3  ;;  %p871_p4 = scmp.lt.s32.totalorder %s869_s6, %s862_s9 }
  0x31   : > { %p866_p11 = pneg %p865_p5  ;;  %p872_p7 = por %p871_p4, %p870_p9 }
  0x33   : > { %p873_p10 = pnand %p872_p7, %p866_p11 }
  0x35   : > { %876 = shalt.err (!%p873_p10)
}
  0x36   : > { %s1056_s24 = smov 32   ;;  %s1057_s25 = smov 2  }
  0x37   : > { %766 = dma.hbm_to_vmem [thread:$0]  (!%p1176_p0), %s1170_s10, 128, %s1172_s12, %s217_s14, %s1056_s24, %s1056_s24, %s1057_s25  }
  0x38   : > { %p264_p12 = scmp.lt.s32.totalorder %s1053_s20, 3  ;;  %s728_s7 = sshll.u32 %s1163_s5, 2 }
  0x39   : > { %s749_s8 = sshll.u32 %s1049_s19, 6  ;;  %p1512_p9 = scmp.ge.s32.totalorder %s1053_s20, 1 }
  0x3a   : > { %s1221_s6 = scalar_lea.hbm %s1498_s1, %s749_s8  ;;  %s245_s22 = scalar_lea.vmem [#allocation5], %s728_s7 }
  0x3b   : > { %p1214_p11 = pnand %p1512_p9, %p264_p12  ;;  %s256_s0 = sshll.u32 %s245_s22, 4  ;;  %s1223_s0 = int_to_ptr.vmem [resolvable:$true] %s256_s0 }
  0x3c   : > { %s242_s10 = scalar_lea.sflag [#allocation6], %s1163_s5  ;;  %s877_s12 = scalar_lea.hbm %s1221_s6, 64 }
  0x3d   : > { %p878_p1 = scmp.ne.s32.totalorder %s1221_s6, %s877_s12  ;;  %s882_s25 = scalar_lea.hbm %s1498_s1, 128 }
  0x3e   : > { %p883_p2 = scmp.lt.u32.totalorder %s1221_s6, %s1498_s1  ;;  %p884_p5 = scmp.lt.u32.totalorder %s882_s25, %s877_s12 }
  0x3f   : > { %p880_p6 = pnand %p878_p1, %p849_p3  ;;  %p886_p7 = scmp.lt.u32.totalorder %s877_s12, %s1221_s6 }
  0x40   : > { %p885_p4 = por %p884_p5, %p883_p2 }
  0x41   : > { %p881_p13 = pneg %p880_p6 }
  0x42   : > { %p887_p10 = por %p886_p7, %p885_p4 }
  0x44   : > { %p888_p12 = pnand %p887_p10, %p881_p13 }
  0x46   : > { %891 = shalt.err (!%p888_p12)
}
  0x47   : > { %s892_s22 = scalar_lea.vmem %s1223_s0, 64  ;;  %s1058_s7 = smov [#allocation5]  }
  0x48   : > { %p893_p9 = scmp.ne.s32.totalorder %s1223_s0, %s892_s22  ;;  %s897_s26 = sshll.u32 %s1058_s7, 4  ;;  %s898_s26 = int_to_ptr.vmem [resolvable:$false] %s897_s26 }
  0x49   : > { %s899_s14 = scalar_lea.vmem %s898_s26, 128  ;;  %p900_p8 = scmp.lt.s32.totalorder %s1223_s0, %s898_s26 }
  0x4a   : > { %p895_p1 = pnand %p893_p9, %p849_p3  ;;  %p901_p2 = scmp.lt.s32.totalorder %s899_s14, %s892_s22 }
  0x4c   : > { %p896_p6 = pneg %p895_p1  ;;  %p902_p5 = por %p901_p2, %p900_p8 }
  0x4e   : > { %p903_p4 = pnand %p902_p5, %p896_p6 }
  0x50   : > { %906 = shalt.err (!%p903_p4)
}
  0x51   : > { %s1059_s12 = smov 16   ;;  %s1060_s24 = smov 1  }
  0x52   : > { %769 = dma.hbm_to_vmem [thread:$0]  (!%p1176_p0), %s1221_s6, 64, %s1223_s0, %s242_s10, %s1059_s12, %s1059_s12, %s1060_s24  }
  0x53   : > { %268 = sbr.rel (%p1214_p11) target bundleno = 204 (0xcc), region = 28  ;;  %s1254_s25 = sand.u32 (!%p1214_p11), 1, %s1037_s16  }
  0x54   : > { %s732_s8 = sshll.u32 (!%p1214_p11), %s1254_s25, 3  ;;  %s271_s11 = scalar_lea.sflag (!%p1214_p11), [#allocation3], %s1254_s25 }
  0x55   : > { %s1258_s22 = scalar_lea.vmem (!%p1214_p11), [#allocation2], %s732_s8  ;;  %p1514_p8 = scmp.ne.s32.totalorder (!%p1214_p11), %s1507_s27, 0 }
  0x5a   : > { %1016 = dma.done.wait (%p1514_p8), %s271_s11, 128  }
  0x5b   : > { %1018 = vsyncadd (%p1514_p8), %s271_s11, 4294967168  ;;  %s733_s0 = sshll.u32 %s1254_s25, 2  ;;  %s280_s5 = scalar_lea.sflag [#allocation6], %s1254_s25 }
  0x5c   : > { %s1266_s13 = scalar_lea.vmem [#allocation5], %s733_s0 }
  0x5d   : > { %1020 = dma.done.wait (%p1514_p8), %s280_s5, 64  }
  0x5e   : > { %1022 = vsyncadd (%p1514_p8), %s280_s5, 4294967232  ;;  %s1272_s9 = scalar_lea.vmem [#allocation8], %s732_s8  ;;  %v1061_v0 = vmov 0.0   ;;  %s1278_s6 = scalar_lea.vmem [#allocation7], %s732_s8  ;;  %vm358_vm0 = vcmask 1041408  }
  0x5f   : > { %338 = vst [vmem:[%s1272_s9] sm:$0x3] %v1061_v0  ;;  %339 = vst [vmem:[%s1272_s9 + $0x2] sm:$0x3] %v1061_v0  ;;  %s1284_s27 = scalar_lea.vmem [#allocation10], %s732_s8  ;;  %s483_s10 = sand.u32 1, %s1123_s21  }
  0x60   : > { %340 = vst [vmem:[%s1272_s9 + $0x4] sm:$0x3] %v1061_v0  ;;  %341 = vst [vmem:[%s1272_s9 + $0x6] sm:$0x3] %v1061_v0  ;;  %s1292_s7 = sshll.u32 %s1045_s18, 7  ;;  %s522_s26 = sshll.u32 %s1272_s9, 4  ;;  %s1342_s26 = int_to_ptr.vmem [resolvable:$true] %s522_s26 }
  0x61   : > { %334 = vst [vmem:[%s1278_s6] sm:$0x3] %v1061_v0  ;;  %335 = vst [vmem:[%s1278_s6 + $0x2] sm:$0x3] %v1061_v0  ;;  %v1296_v1 = vld [vmem:[%s1266_s13] sm:$0x1]  ;;  %s1338_s12 = scalar_lea.hbm %s1500_s3, %s1292_s7  ;;  %s1347_s24 = scalar_lea.sflag [#allocation9], %s483_s10 }
  0x62   : > { %336 = vst [vmem:[%s1278_s6 + $0x4] sm:$0x3] %v1061_v0  ;;  %337 = vst [vmem:[%s1278_s6 + $0x6] sm:$0x3] %v1061_v0  ;;  %v1299_v2 = vld [vmem:[%s1266_s13 + $0x1] sm:$0x1]  ;;  %v354_v4 = vunpack.c.l.bf16 %v1296_v1 }
  0x63   : > { %342 = vst [vmem:[%s1284_s27] sm:$0x3] %v1061_v0  ;;  %343 = vst [vmem:[%s1284_s27 + $0x2] sm:$0x3] %v1061_v0  ;;  %v1302_v3 = vld [vmem:[%s1266_s13 + $0x2] sm:$0x1]  ;;  %v355_v6 = vunpack.c.l.bf16 %v1299_v2  ;;  %s907_s8 = scalar_lea.vmem %s1342_s26, 128 }
  0x64   : > { %344 = vst [vmem:[%s1284_s27 + $0x4] sm:$0x3] %v1061_v0  ;;  %345 = vst [vmem:[%s1284_s27 + $0x6] sm:$0x3] %v1061_v0  ;;  %v356_v8 = vunpack.c.l.bf16 %v1302_v3  ;;  %v1311_v10 = vld [vmem:[%s1266_s13 + $0x3] sm:$0x1]  ;;  %p908_p0 = scmp.ne.s32.totalorder %s1342_s26, %s907_s8 }
  0x65   : > { %v346_v12 = vld [vmem:[%s1258_s22] sm:$0x3]  ;;  %v357_v16 = vunpack.c.l.bf16 %v1311_v10  ;;  %v347_v17 = vld [vmem:[%s1258_s22 + $0x2] sm:$0x3]  ;;  %v348_v18 = vld [vmem:[%s1258_s22 + $0x4] sm:$0x3] }
  0x66   : > { %v454_v5 = vld [vmem:[%s1272_s9] sm:$0x3]  ;;  %v455_v7 = vld [vmem:[%s1272_s9 + $0x2] sm:$0x3]  ;;  %v349_v19 = vld [vmem:[%s1258_s22 + $0x6] sm:$0x3] }
  0x67   : > { %v456_v9 = vld [vmem:[%s1272_s9 + $0x4] sm:$0x3]  ;;  %v457_v11 = vld [vmem:[%s1272_s9 + $0x6] sm:$0x3]  ;;  %v458_v13 = vadd.f32 %v454_v5, %v354_v4  ;;  %v459_v14 = vadd.f32 %v455_v7, %v355_v6  ;;  %v359_v20 = vsel %vm358_vm0, %v346_v12, -inf  ;;  %v360_v21 = vsel %vm358_vm0, %v347_v17, -inf }
  0x68   : > { %v460_v15 = vadd.f32 %v456_v9, %v356_v8  ;;  %v361_v22 = vsel %vm358_vm0, %v348_v18, -inf  ;;  %v362_v23 = vsel %vm358_vm0, %v349_v19, -inf  ;;  %v461_v24 = vadd.f32 %v457_v11, %v357_v16  ;;  %p1515_p3 = scmp.ne.s32.totalorder %s1508_s28, 0  ;;  %s1062_s11 = smov [#allocation8]  }
  0x69   : > { %462 = vst [vmem:[%s1272_s9] sm:$0x3] %v458_v13  ;;  %463 = vst [vmem:[%s1272_s9 + $0x2] sm:$0x3] %v459_v14  ;;  %v363_v25 = vmax.f32 %v359_v20, %v360_v21  ;;  %v364_v26 = vmax.f32 %v361_v22, %v362_v23  ;;  %s911_s22 = sshll.u32 %s1062_s11, 4  ;;  %s912_s22 = int_to_ptr.vmem [resolvable:$false] %s911_s22 }
  0x6a   : > { %464 = vst [vmem:[%s1272_s9 + $0x4] sm:$0x3] %v460_v15  ;;  %465 = vst [vmem:[%s1272_s9 + $0x6] sm:$0x3] %v461_v24  ;;  %p909_p11 = pnand %p908_p0, %p1515_p3  ;;  %s913_s0 = scalar_lea.vmem %s912_s22, 256 }
  0x6b   : > { %v365_v27 = vmax.f32 %v363_v25, %v364_v26  ;;  %p914_p7 = scmp.lt.s32.totalorder %s1342_s26, %s912_s22  ;;  %p915_p10 = scmp.lt.s32.totalorder %s913_s0, %s907_s8 }
  0x6c   : > { %p910_p13 = pneg %p909_p11 }
  0x6d   : > { %p916_p12 = por %p915_p10, %p914_p7 }
  0x6f   : > { %p917_p9 = pnand %p916_p12, %p910_p13 }
  0x71   : > { %920 = shalt.err (!%p917_p9)
}
  0x72   : > { %s921_s21 = scalar_lea.hbm %s1338_s12, 128  ;;  %s925_s9 = scalar_lea.hbm %s1500_s3, 256 }
  0x73   : > { %p922_p1 = scmp.ne.s32.totalorder %s1338_s12, %s921_s21  ;;  %p926_p5 = scmp.lt.u32.totalorder %s1338_s12, %s1500_s3 }
  0x74   : > { %p927_p4 = scmp.lt.u32.totalorder %s925_s9, %s921_s21  ;;  %p929_p0 = scmp.lt.u32.totalorder %s921_s21, %s1338_s12 }
  0x75   : > { %p923_p6 = pnand %p922_p1, %p1515_p3 }
  0x76   : > { %p928_p8 = por %p927_p4, %p926_p5 }
  0x77   : > { %p924_p2 = pneg %p923_p6 }
  0x78   : > { %p930_p11 = por %p929_p0, %p928_p8 }
  0x7a   : > { %p931_p13 = pnand %p930_p11, %p924_p2 }
  0x7c   : > { %934 = shalt.err (!%p931_p13)
}
  0x7d   : > { %s1063_s14 = smov 32   ;;  %s1064_s8 = smov 2   ;;  %v366_v28 = vsub.f32 %v346_v12, %v365_v27  ;;  %v367_v29 = vsub.f32 %v347_v17, %v365_v27  ;;  %v368_v30 = vsub.f32 %v348_v18, %v365_v27  ;;  %v369_v31 = vsub.f32 %v349_v19, %v365_v27  ;;  %v438_v48 = vld [vmem:[%s1278_s6] sm:$0x3]  ;;  %v439_v49 = vld [vmem:[%s1278_s6 + $0x2] sm:$0x3] }
  0x7e   : > { %758 = dma.vmem_to_hbm [thread:$0]  (%p1515_p3), %s1342_s26, 128, %s1338_s12, %s1347_s24, %s1063_s14, %s1063_s14, %s1064_s8  }
  0x7f   : > { %v370_v32 = vmul.f32 1.442695, %v366_v28  ;;  %v372_v33 = vmul.f32 1.442695, %v367_v29  ;;  %v374_v34 = vmul.f32 1.442695, %v368_v30  ;;  %s1400_s0 = scalar_lea.hbm %s1501_s4, %s1292_s7  ;;  %s1408_s13 = scalar_lea.hbm %s1499_s2, %s1292_s7 }
  0x80   : > { %v376_v35 = vmul.f32 1.442695, %v369_v31  ;;  %v466_v50 = vld [vmem:[%s1284_s27] sm:$0x3]  ;;  %v467_v51 = vld [vmem:[%s1284_s27 + $0x2] sm:$0x3] }
  0x81   : > { %837 = vpow2.f32 %v370_v32  ;;  %v468_v56 = vld [vmem:[%s1284_s27 + $0x4] sm:$0x3]  ;;  %v469_v57 = vld [vmem:[%s1284_s27 + $0x6] sm:$0x3]  ;;  %s540_s26 = sshll.u32 %s1284_s27, 4  ;;  %s504_s12 = sshll.u32 %s1278_s6, 4  ;;  %s1402_s26 = int_to_ptr.vmem [resolvable:$true] %s540_s26  ;;  %s1410_s12 = int_to_ptr.vmem [resolvable:$true] %s504_s12 }
  0x82   : > { %839 = vpow2.f32 %v372_v33  ;;  %v440_v58 = vld [vmem:[%s1278_s6 + $0x4] sm:$0x3]  ;;  %v441_v59 = vld [vmem:[%s1278_s6 + $0x6] sm:$0x3]  ;;  %s935_s9 = scalar_lea.vmem %s1402_s26, 128  ;;  %s1065_s10 = smov [#allocation10]  }
  0x83   : > { %841 = vpow2.f32 %v374_v34  ;;  %p936_p7 = scmp.ne.s32.totalorder %s1402_s26, %s935_s9  ;;  %s939_s18 = sshll.u32 %s1065_s10, 4  ;;  %s940_s18 = int_to_ptr.vmem [resolvable:$false] %s939_s18 }
  0x84   : > { %843 = vpow2.f32 %v376_v35  ;;  %s941_s7 = scalar_lea.vmem %s940_s18, 256  ;;  %p942_p9 = scmp.lt.s32.totalorder %s1402_s26, %s940_s18 }
  0x85   : > { %p937_p10 = pnand %p936_p7, %p1515_p3  ;;  %p943_p1 = scmp.lt.s32.totalorder %s941_s7, %s935_s9 }
  0x87   : > { %p938_p12 = pneg %p937_p10  ;;  %p944_p6 = por %p943_p1, %p942_p9 }
  0x89   : > { %p945_p2 = pnand %p944_p6, %p938_p12 }
  0x8b   : > { %v838_v36 = vpop.eup %837 }
  0x8c   : > { %v840_v37 = vpop.eup %839  ;;  %v378_v38 = vsel %vm358_vm0, %v838_v36, 0.0 }
  0x8d   : > { %v842_v39 = vpop.eup %841  ;;  %v379_v40 = vsel %vm358_vm0, %v840_v37, 0.0 }
  0x8e   : > { %v844_v41 = vpop.eup %843  ;;  %v380_v42 = vadd.f32 %v379_v40, %v378_v38  ;;  %v381_v43 = vsel %vm358_vm0, %v842_v39, 0.0 }
  0x8f   : > { %v383_v44 = vsel %vm358_vm0, %v844_v41, 0.0 }
  0x90   : > { %v382_v45 = vadd.f32 %v381_v43, %v380_v42 }
  0x92   : > { %v384_v46 = vadd.f32 %v383_v44, %v382_v45 }
  0x94   : > { %845 = vrcp.f32 %v384_v46 }
  0x9e   : > { %v846_v47 = vpop.eup %845 }
  0x9f   : > { %v386_v52 = vmul.f32 %v846_v47, %v838_v36  ;;  %v387_v53 = vmul.f32 %v846_v47, %v840_v37  ;;  %v388_v54 = vmul.f32 %v846_v47, %v842_v39  ;;  %v389_v55 = vmul.f32 %v846_v47, %v844_v41 }
  0xa1   : > { %v442_v60 = vmul.f32 %v386_v52, %v354_v4  ;;  %v443_v61 = vmul.f32 %v387_v53, %v355_v6  ;;  %v444_v62 = vmul.f32 %v388_v54, %v356_v8  ;;  %v445_v63 = vmul.f32 %v389_v55, %v357_v16 }
  0xa2   : > { %v470_v0 = vadd.f32 %v466_v50, %v386_v52  ;;  %v471_v1 = vadd.f32 %v467_v51, %v387_v53  ;;  %v472_v2 = vadd.f32 %v468_v56, %v388_v54  ;;  %v473_v3 = vadd.f32 %v469_v57, %v389_v55 }
  0xa3   : > { %v446_v4 = vadd.f32 %v442_v60, %v438_v48  ;;  %v447_v5 = vadd.f32 %v443_v61, %v439_v49  ;;  %v448_v6 = vadd.f32 %v444_v62, %v440_v58  ;;  %v449_v7 = vadd.f32 %v445_v63, %v441_v59 }
  0xa4   : > { %474 = vst [vmem:[%s1284_s27] sm:$0x3] %v470_v0  ;;  %475 = vst [vmem:[%s1284_s27 + $0x2] sm:$0x3] %v471_v1 }
  0xa5   : > { %476 = vst [vmem:[%s1284_s27 + $0x4] sm:$0x3] %v472_v2  ;;  %477 = vst [vmem:[%s1284_s27 + $0x6] sm:$0x3] %v473_v3 }
  0xa6   : > { %450 = vst [vmem:[%s1278_s6] sm:$0x3] %v446_v4  ;;  %451 = vst [vmem:[%s1278_s6 + $0x2] sm:$0x3] %v447_v5 }
  0xa7   : > { %452 = vst [vmem:[%s1278_s6 + $0x4] sm:$0x3] %v448_v6  ;;  %453 = vst [vmem:[%s1278_s6 + $0x6] sm:$0x3] %v449_v7 }
  0xa8   : > { %948 = shalt.err (!%p945_p2)
}
  0xa9   : > { %s949_s6 = scalar_lea.hbm %s1400_s0, 128  ;;  %s953_s22 = scalar_lea.hbm %s1501_s4, 256 }
  0xaa   : > { %p950_p5 = scmp.ne.s32.totalorder %s1400_s0, %s949_s6  ;;  %p954_p0 = scmp.lt.u32.totalorder %s1400_s0, %s1501_s4 }
  0xab   : > { %p955_p11 = scmp.lt.u32.totalorder %s953_s22, %s949_s6  ;;  %p957_p7 = scmp.lt.u32.totalorder %s949_s6, %s1400_s0 }
  0xac   : > { %p951_p4 = pnand %p950_p5, %p1515_p3 }
  0xad   : > { %p956_p13 = por %p955_p11, %p954_p0 }
  0xae   : > { %p952_p8 = pneg %p951_p4 }
  0xaf   : > { %p958_p10 = por %p957_p7, %p956_p13 }
  0xb1   : > { %p959_p12 = pnand %p958_p10, %p952_p8 }
  0xb3   : > { %962 = shalt.err (!%p959_p12)
}
  0xb4   : > { %759 = dma.vmem_to_hbm [thread:$0]  (%p1515_p3), %s1402_s26, 128, %s1400_s0, %s1347_s24, %s1063_s14, %s1063_s14, %s1064_s8  }
  0xb5   : > { %s479_s9 = scalar_lea.sflag [#allocation4], %s1254_s25  ;;  %s963_s10 = scalar_lea.vmem %s1410_s12, 128 }
  0xb6   : > { %p964_p9 = scmp.ne.s32.totalorder %s1410_s12, %s963_s10  ;;  %s1066_s18 = smov [#allocation7]  }
  0xb7   : > { %s967_s7 = sshll.u32 %s1066_s18, 4  ;;  %s968_s7 = int_to_ptr.vmem [resolvable:$false] %s967_s7 }
  0xb8   : > { %p965_p1 = pnand %p964_p9, %p1515_p3  ;;  %s969_s6 = scalar_lea.vmem %s968_s7, 256 }
  0xb9   : > { %p970_p2 = scmp.lt.s32.totalorder %s1410_s12, %s968_s7  ;;  %p971_p5 = scmp.lt.s32.totalorder %s969_s6, %s963_s10 }
  0xba   : > { %p966_p6 = pneg %p965_p1 }
  0xbb   : > { %p972_p4 = por %p971_p5, %p970_p2 }
  0xbd   : > { %p973_p8 = pnand %p972_p4, %p966_p6 }
  0xbf   : > { %976 = shalt.err (!%p973_p8)
}
  0xc0   : > { %s977_s24 = scalar_lea.hbm %s1408_s13, 128  ;;  %s981_s27 = scalar_lea.hbm %s1499_s2, 256 }
  0xc1   : > { %p978_p0 = scmp.ne.s32.totalorder %s1408_s13, %s977_s24  ;;  %p982_p7 = scmp.lt.u32.totalorder %s1408_s13, %s1499_s2 }
  0xc2   : > { %p983_p10 = scmp.lt.u32.totalorder %s981_s27, %s977_s24  ;;  %p985_p9 = scmp.lt.u32.totalorder %s977_s24, %s1408_s13 }
  0xc3   : > { %p979_p11 = pnand %p978_p0, %p1515_p3 }
  0xc4   : > { %p984_p12 = por %p983_p10, %p982_p7 }
  0xc5   : > { %p980_p13 = pneg %p979_p11 }
  0xc6   : > { %p986_p1 = por %p985_p9, %p984_p12 }
  0xc8   : > { %p987_p6 = pnand %p986_p1, %p980_p13 }
  0xca   : > { %990 = shalt.err (!%p987_p6)
}
  0xcb   : > { %757 = dma.vmem_to_hbm [thread:$0]  (%p1515_p3), %s1410_s12, 128, %s1408_s13, %s479_s9, %s1063_s14, %s1063_s14, %s1064_s8  }
  0xcc PF: > { %s555_s21 = sand.u32 1, %s1033_s15   ;;  %p1516_p2 = scmp.ne.s32.totalorder %s1509_s30, 0 }
  0xcd   : > { %p1517_p5 = scmp.ge.s32.totalorder %s1053_s20, 2  ;;  %s556_s5 = scalar_lea.sflag [#allocation4], %s555_s21 }
  0xcf   : > { %p771_p4 = pnand %p1517_p5, %p1516_p2 }
  0xd1   : > { %1024 = dma.done.wait (!%p771_p4), %s556_s5, 128  }
  0xd2   : > { %1026 = vsyncadd (!%p771_p4), %s556_s5, 4294967168  ;;  %s1518_s28 = sadd.s32 4294967294, %s1053_s20  }
  0xd3   : > { %s564_s10 = sand.u32 1, %s1518_s28  }
  0xd4   : > { %s565_s18 = scalar_lea.sflag [#allocation9], %s564_s10 }
  0xd5   : > { %1028 = dma.done.wait (!%p771_p4), %s565_s18, 256  }
  0xd6   : > { %1030 = vsyncadd (!%p771_p4), %s565_s18, 4294967040  ;;  %s27_s20 = sadd.s32 1, %s1053_s20   ;;  %s1519_s15 = smov %s1037_s16 }
  0xd7   : > { %p24_p3 = scmp.ge.s32.totalorder %s27_s20, 4   ;;  %s1520_s16 = smov %s1041_s17 }
  0xd8   : > { %s1521_s17 = smov %s1154_s29  ;;  %s1522_s18 = smov %s1049_s19 }
  0xd9   : > { %s1523_s19 = smov %s1525_s23  ;;  %26 = sbr.rel (!%p24_p3) target bundleno = 12 (0xc), region = 130 }
  0xe0   :  { %579 = vsyncpa [#allocation3], 1 }
  0xe1   :  { %581 = vsyncpa [#allocation3 + $0x1], 1 }
  0xe2   :  { %582 = vsyncpa [#allocation6], 1 }
  0xe3   :  { %584 = vsyncpa [#allocation6 + $0x1], 1 }
  0xe4   :  { %585 = vsyncpa [#allocation4], 1 }
  0xe5   :  { %587 = vsyncpa [#allocation4 + $0x1], 1 }
  0xe6   :  { %588 = vsyncpa [#allocation9], 1 }
  0xe7   :  { %590 = vsyncpa [#allocation9 + $0x1], 1 }

</bundles_post_ra>
